<compile_context>
chip_gen: v6e
topology: v6e:2x2x1
jax: 0.10.0
libtpu: 0.0.40
codegen_flags: <defaults>
</compile_context>

<pallas_src>
from typing import NamedTuple, Tuple

import jax
import jax.numpy as jnp
from jax.experimental import pallas as pl
from jax.experimental.pallas import tpu as pltpu


# --------------------------- tile selection -------------------------------- #

def _batch_tile(B: int) -> int:
    """Tile the batch axis only when it stays 8-aligned; otherwise keep it whole
    (full-extent blocks always satisfy the (8,128) constraint)."""
    if B > 8 and B % 8 == 0:
        return 8
    return B


def _seq_tile(tb: int, S: int, H: int, itemsize: int, n_hidden_inputs: int,
              budget_bytes: int = 12 * 1024 * 1024) -> int:
    """Largest multiple-of-8 divisor of S whose hidden blocks (double-buffered,
    n_hidden_inputs of them) fit `budget_bytes`; falls back to full S.

    Requiring TS | S avoids partial (garbage-padded) reduction blocks."""
    per_block = max(budget_bytes // (2 * n_hidden_inputs), 1)
    max_ts = per_block // max(tb * H * itemsize, 1)
    if S <= max_ts:
        return S
    ts = (min(max_ts, S) // 8) * 8
    while ts >= 8:
        if S % ts == 0:
            return ts
        ts -= 8
    return S


_COMPILER_PARAMS_REDUCE = pltpu.CompilerParams(
    dimension_semantics=("parallel", "arbitrary"),
    vmem_limit_bytes=32 * 1024 * 1024,
)
_COMPILER_PARAMS_CLS = pltpu.CompilerParams(
    dimension_semantics=("parallel",),
    vmem_limit_bytes=32 * 1024 * 1024,
)


# ----------------------------- kernels ------------------------------------- #

def _cls_kernel(h_ref, out_ref):
    # h_ref: (TB, TS0, H) -- only sequence row 0 is used; out_ref: (TB, H)
    out_ref[...] = h_ref[:, 0, :]


def _avg_kernel(mask_ref, inv_ref, h_ref, out_ref, acc_ref):
    # mask_ref: (TB, TS, 1) f32; inv_ref: (TB, 1) f32
    # h_ref: (TB, TS, H); out_ref: (TB, H); acc_ref: (TB, H) f32 scratch
    k = pl.program_id(1)

    @pl.when(k == 0)
    def _():
        acc_ref[...] = jnp.zeros_like(acc_ref)

    h = h_ref[...].astype(jnp.float32)
    acc_ref[...] += jnp.sum(h * mask_ref[...], axis=1)

    @pl.when(k == pl.num_programs(1) - 1)
    def _():
        out_ref[...] = (acc_ref[...] * inv_ref[...]).astype(out_ref.dtype)


def _avg_pair_kernel(mask_ref, inv_ref, h1_ref, h2_ref, out_ref, acc_ref):
    # Same as _avg_kernel but sums two hidden-state tensors; the 0.5 factor is
    # folded into inv_ref by the wrapper. Accumulation is in f32.
    k = pl.program_id(1)

    @pl.when(k == 0)
    def _():
        acc_ref[...] = jnp.zeros_like(acc_ref)

    h = h1_ref[...].astype(jnp.float32) + h2_ref[...].astype(jnp.float32)
    acc_ref[...] += jnp.sum(h * mask_ref[...], axis=1)

    @pl.when(k == pl.num_programs(1) - 1)
    def _():
        out_ref[...] = (acc_ref[...] * inv_ref[...]).astype(out_ref.dtype)


# ----------------------------- wrappers ------------------------------------ #

def _cls_pool(last_hidden: jax.Array) -> jax.Array:
    B, S, H = last_hidden.shape
    TB = _batch_tile(B)
    TS0 = S if S < 8 else 8          # only the leading (aligned) rows are DMA'd
    return pl.pallas_call(
        _cls_kernel,
        out_shape=jax.ShapeDtypeStruct((B, H), last_hidden.dtype),
        grid_spec=pltpu.PrefetchScalarGridSpec(
            num_scalar_prefetch=0,
            grid=(B // TB,),
            in_specs=[pl.BlockSpec((TB, TS0, H), lambda i: (i, 0, 0))],
            out_specs=pl.BlockSpec((TB, H), lambda i: (i, 0)),
        ),
        compiler_params=_COMPILER_PARAMS_CLS,
    )(last_hidden)


def _avg_pool(attention_mask: jax.Array, last_hidden: jax.Array) -> jax.Array:
    B, S, H = last_hidden.shape
    mask_f = attention_mask.astype(jnp.float32).reshape(B, S, 1)
    # NOTE: all-zero mask rows divide by zero (NaN), matching the PyTorch reference.
    inv = 1.0 / jnp.sum(mask_f, axis=1)                      # (B, 1) f32
    TB = _batch_tile(B)
    TS = _seq_tile(TB, S, H, last_hidden.dtype.itemsize, n_hidden_inputs=1)
    return pl.pallas_call(
        _avg_kernel,
        out_shape=jax.ShapeDtypeStruct((B, H), last_hidden.dtype),
        grid_spec=pltpu.PrefetchScalarGridSpec(
            num_scalar_prefetch=0,
            grid=(B // TB, S // TS),
            in_specs=[
                pl.BlockSpec((TB, TS, 1), lambda i, k: (i, k, 0)),   # mask
                pl.BlockSpec((TB, 1), lambda i, k: (i, 0)),          # 1/denom
                pl.BlockSpec((TB, TS, H), lambda i, k: (i, k, 0)),   # hidden
            ],
            out_specs=pl.BlockSpec((TB, H), lambda i, k: (i, 0)),
            scratch_shapes=[pltpu.VMEM((TB, H), jnp.float32)],
        ),
        compiler_params=_COMPILER_PARAMS_REDUCE,
    )(mask_f, inv, last_hidden)


def _avg_pair_pool(attention_mask: jax.Array,
                   h1: jax.Array, h2: jax.Array) -> jax.Array:
    B, S, H = h1.shape
    mask_f = attention_mask.astype(jnp.float32).reshape(B, S, 1)
    # 0.5 (the "/2" of the pair poolers) folded into the precomputed reciprocal.
    inv = 0.5 / jnp.sum(mask_f, axis=1)                      # (B, 1) f32
    TB = _batch_tile(B)
    TS = _seq_tile(TB, S, H, h1.dtype.itemsize, n_hidden_inputs=2)
    return pl.pallas_call(
        _avg_pair_kernel,
        out_shape=jax.ShapeDtypeStruct((B, H), h1.dtype),
        grid_spec=pltpu.PrefetchScalarGridSpec(
            num_scalar_prefetch=0,
            grid=(B // TB, S // TS),
            in_specs=[
                pl.BlockSpec((TB, TS, 1), lambda i, k: (i, k, 0)),   # mask
                pl.BlockSpec((TB, 1), lambda i, k: (i, 0)),          # 0.5/denom
                pl.BlockSpec((TB, TS, H), lambda i, k: (i, k, 0)),   # hidden 1
                pl.BlockSpec((TB, TS, H), lambda i, k: (i, k, 0)),   # hidden 2
            ],
            out_specs=pl.BlockSpec((TB, H), lambda i, k: (i, 0)),
            scratch_shapes=[pltpu.VMEM((TB, H), jnp.float32)],
        ),
        compiler_params=_COMPILER_PARAMS_REDUCE,
    )(mask_f, inv, h1, h2)


class ModelOutputs(NamedTuple):
    last_hidden_state: jax.Array
    pooler_output: jax.Array
    hidden_states: Tuple[jax.Array, ...]


class Pooler:
    """Parameter-free pooler; Pallas-backed forward pass."""

    def __init__(self, pooler_type: str):
        assert pooler_type in ['cls', 'cls_before_pooler', 'avg',
                               'avg_top2', 'avg_first_last'], \
            'unrecognized pooling type %s' % pooler_type
        self.pooler_type = pooler_type

    def __call__(self, attention_mask: jax.Array, outputs: ModelOutputs):
        last_hidden = outputs.last_hidden_state
        hidden_states = outputs.hidden_states
        if self.pooler_type in ['cls_before_pooler', 'cls']:
            return _cls_pool(last_hidden)
        elif self.pooler_type == 'avg':
            return _avg_pool(attention_mask, last_hidden)
        elif self.pooler_type == 'avg_first_last':
            return _avg_pair_pool(attention_mask,
                                  hidden_states[1], hidden_states[-1])
        elif self.pooler_type == 'avg_top2':
            return _avg_pair_pool(attention_mask,
                                  hidden_states[-1], hidden_states[-2])
        else:
            raise NotImplementedError


# ----------------------------- reference ---------------------------------- #

def _reference(pooler_type, attention_mask, outputs):
    last_hidden = outputs.last_hidden_state
    hidden_states = outputs.hidden_states
    mask = attention_mask.astype(jnp.float32)
    if pooler_type in ['cls_before_pooler', 'cls']:
        return last_hidden[:, 0]
    if pooler_type == 'avg':
        return (last_hidden * mask[:, :, None]).sum(1) / mask.sum(-1)[:, None]
    if pooler_type == 'avg_first_last':
        h = (hidden_states[1] + hidden_states[-1]) / 2.0
        return (h * mask[:, :, None]).sum(1) / mask.sum(-1)[:, None]
    if pooler_type == 'avg_top2':
        h = (hidden_states[-1] + hidden_states[-2]) / 2.0
        return (h * mask[:, :, None]).sum(1) / mask.sum(-1)[:, None]
    raise NotImplementedError


# ------------------------------- main -------------------------------------- #

if __name__ == "__main__":
    B, S, H = 2, 8, 32
    n_layers = 3  # hidden_states = (embeddings, layer1, layer2); last == last_hidden_state

    key = jax.random.PRNGKey(0)
    keys = jax.random.split(key, n_layers + 2)

    hidden_states = tuple(
        jax.random.normal(keys[i], (B, S, H), dtype=jnp.float32)
        for i in range(n_layers)
    )
    last_hidden = hidden_states[-1]
    pooler_output = jax.random.normal(keys[n_layers], (B, H), dtype=jnp.float32)

    # attention mask: first row fully attended, second row half padded
    attention_mask = jnp.concatenate(
        [jnp.ones((1, S), dtype=jnp.int32),
         jnp.concatenate([jnp.ones((1, S // 2), dtype=jnp.int32),
                          jnp.zeros((1, S - S // 2), dtype=jnp.int32)], axis=1)],
        axis=0,
    )

    outputs = ModelOutputs(last_hidden_state=last_hidden,
                           pooler_output=pooler_output,
                           hidden_states=hidden_states)

    ok = True
    for ptype in ['cls', 'cls_before_pooler', 'avg', 'avg_first_last', 'avg_top2']:
        pooler = Pooler(ptype)
        got = jax.block_until_ready(pooler(attention_mask, outputs))
        want = _reference(ptype, attention_mask, outputs)
        assert got.shape == (B, H), (ptype, got.shape)
        if not jnp.allclose(got, want, atol=1e-5, rtol=1e-5):
            ok = False
            print(f"MISMATCH for {ptype}")

    if ok:
        print("KERNEL_OK")
</pallas_src>

<mosaic_0001>
module attributes {stable_mosaic.version = 11 : i64} {
  func.func @_cls_kernel(%arg0: i32, %arg1: memref<2x8x32xf32, #tpu.memory_space<vmem>>, %arg2: memref<2x32xf32, #tpu.memory_space<vmem>>) attributes {dimension_semantics = [#tpu.dimension_semantics<parallel>], iteration_bounds = array<i64: 1>, scalar_prefetch = 0 : i64, scratch_operands = 0 : i64, tpu.core_type = #tpu.core_type<tc>, window_params = [{transform_indices = @transform_0, window_bounds = array<i64: 2, 8, 32>}, {transform_indices = @transform_1, window_bounds = array<i64: 2, 32>}]} {
    %c0 = arith.constant 0 : index
    %c0_0 = arith.constant 0 : index
    %c0_1 = arith.constant 0 : index
    %0 = vector.load %arg1[%c0, %c0_0, %c0_1] : memref<2x8x32xf32, #tpu.memory_space<vmem>>, vector<2x1x32xf32>
    %1 = vector.shape_cast %0 : vector<2x1x32xf32> to vector<2x32xf32>
    %c0_2 = arith.constant 0 : index
    %c0_3 = arith.constant 0 : index
    %2 = vector.load %arg2[%c0_2, %c0_3] : memref<2x32xf32, #tpu.memory_space<vmem>>, vector<2x32xf32>
    tpu.vector_store %arg2[%c0_2, %c0_3], %1 {strides = array<i32>} : memref<2x32xf32, #tpu.memory_space<vmem>>, vector<2x32xf32>,
    return
  }
  func.func @transform_0(%arg0: i32) -> (i32, i32, i32) {
    %c0_i32 = arith.constant 0 : i32
    %c0_i32_0 = arith.constant 0 : i32
    %c0_i32_1 = arith.constant 0 : i32
    return %arg0, %c0_i32, %c0_i32_0 : i32, i32, i32
  }
  func.func @transform_1(%arg0: i32) -> (i32, i32) {
    %c0_i32 = arith.constant 0 : i32
    %c0_i32_0 = arith.constant 0 : i32
    return %arg0, %c0_i32 : i32, i32
  }
}

</mosaic_0001>

<bundles_post_ra>
// kernel: tpu_custom_call.1
= control target key start
LH: loop header
LB: loop body
LE: loop exit
PB: predicated region body
PF: predicated region fallthrough
CT: control target
= control target key end

     0   :  { %6 = vsyncpa [#allocation3], 0  ;;  %s116_s0 = inlined_call_operand.hbm [shape: f32[2,8,32], index: 0, kind: input, shape index: {}]   ;;  %s117_s1 = inlined_call_operand.hbm [shape: f32[2,32], index: 1, kind: output, shape index: {}]  }
   0x1   :  { %7 = vsyncpa [#allocation4], 0  ;;  %s96_s6 = smov [#allocation2]  }
   0x2   :  { %s13_s7 = sshll.u32 %s96_s6, 4  ;;  %s14_s7 = int_to_ptr.vmem [resolvable:$true] %s13_s7 }
   0x3   :  { %s60_s8 = scalar_lea.vmem %s14_s7, 256  ;;  %p65_p1 = scmp.lt.s32.totalorder %s14_s7, %s14_s7 }
   0x4   :  { %p61_p0 = scmp.ne.s32.totalorder %s14_s7, %s60_s8  ;;  %p66_p2 = scmp.lt.s32.totalorder %s60_s8, %s60_s8 }
   0x6   :  { %p67_p3 = por %p66_p2, %p65_p1 }
   0x8   :  { %p68_p4 = pnand %p67_p3, %p61_p0 }
   0xa   :  { %71 = shalt.err (!%p68_p4)
}
   0xb   :  { %s97_s9 = smov 128   ;;  %s98_s10 = smov 8  }
   0xc   :  { %19 = dma.hbm_to_vmem [thread:$0]  %s116_s0, 256, %s14_s7, [#allocation3], %s97_s9, %s97_s9, %s98_s10  }
   0xd   :  { %92 = dma.done.wait [#allocation3], 256  }
   0xe   :  { %93 = vsyncadd [#allocation3], 4294967040  ;;  %s99_s13 = smov [#allocation5]   ;;  %v23_v0 = vld [vmem:[#allocation2] sm:$0x1]  ;;  %vm28_vm0 = vcmask 1041409  }
   0xf   :  { %s39_s14 = sshll.u32 %s99_s13, 4  ;;  %v24_v1 = vld [vmem:[#allocation2 + $0x8] sm:$0x1]  ;;  %vm31_vm1 = vcmask 254976   ;;  %s40_s14 = int_to_ptr.vmem [resolvable:$true] %s39_s14 }
  0x10   :  { %v27_v2 = vrot.slane %v24_v1, 7  ;;  %s72_s15 = scalar_lea.vmem %s40_s14, 32  ;;  %p77_p6 = scmp.lt.s32.totalorder %s40_s14, %s40_s14 }
  0x11   :  { %p73_p5 = scmp.ne.s32.totalorder %s40_s14, %s72_s15  ;;  %p78_p7 = scmp.lt.s32.totalorder %s72_s15, %s72_s15 }
  0x12   :  { %v29_v3 = vsel %vm28_vm0, %v27_v2, %v23_v0 }
  0x13   :  { %32 = vst.msk [vmem:[#allocation5] sm:$0x3] %vm31_vm1, %v29_v3  ;;  %p79_p8 = por %p78_p7, %p77_p6 }
  0x15   :  { %p80_p9 = pnand %p79_p8, %p73_p5 }
  0x17   :  { %83 = shalt.err (!%p80_p9)
}
  0x18   :  { %42 = dma.vmem_to_hbm [thread:$0]  %s40_s14, 32, %s117_s1, [#allocation4]  }
  0x19   :  { %94 = dma.done.wait [#allocation4], 32  }
  0x1a   :  { %95 = vsyncadd [#allocation4], 4294967264 }
  0x1b   :  { %46 = vsyncpa [#allocation3], 1 }
  0x1c   :  { %47 = vsyncpa [#allocation4], 1 }

</bundles_post_ra>
